<compile_context>
chip_gen: v5e
topology: v5e:2x2
jax: 0.10.0
libtpu: 0.0.40
codegen_flags: <defaults>
</compile_context>

<pallas_src>
import functools

import jax
import jax.numpy as jnp
from jax.experimental import pallas as pl
from jax.experimental.pallas import tpu as pltpu


def _round_up(x, m):
    return ((x + m - 1) // m) * m


# -----------------------------------------------------------------------------
# Pallas kernel: WordKVMN memory + classifier (one (batch, L-tile) grid step)
# -----------------------------------------------------------------------------
def wmseg_kernel(hidden_ref, emba_ref, mask_ref, lvm_ref, de_ref,
                 ect_ref, wcls_ref, logits_ref, *, inv_temper, num_ec):
    hidden = hidden_ref[0]                        # (TL, H)   bf16
    emba_t = emba_ref[0]                          # (H, Wp)   bf16  (pre-transposed)
    mask = mask_ref[0].astype(jnp.float32)        # (TL, Wp)  0/clamped, 0 in pad lanes
    lvm = lvm_ref[0].astype(jnp.int32)            # (TL, Wp)  label-value matrix
    de = de_ref[0]                                # (TL, H)   bf16, sum_w(Ed + Ee)
    ect = ect_ref[...]                            # (Kp, H)   bf16, embedding_c table
    wcls = wcls_ref[...]                          # (H, Cp)   bf16, classifier weight^T

    # u = hidden_state @ embedding_a^T / temper   (bf16 MXU, f32 accumulation)
    u = jnp.dot(hidden, emba_t, preferred_element_type=jnp.float32) * inv_temper

    # Masked exp-normalisation, exactly  exp(u)*m / (sum(exp(u)*m) + 1e-10).
    # Row max is taken over masked lanes only (clamped at 0) so fully-masked
    # rows give p == 0 instead of NaN, and exp() never overflows.
    u_masked = jnp.where(mask > 0.0, u, -1e30)
    u_max = jnp.maximum(jnp.max(u_masked, axis=1, keepdims=True), 0.0)
    delta = jnp.where(mask > 0.0, jnp.exp(u - u_max) * mask, 0.0)   # (TL, Wp)
    denom = jnp.sum(delta, axis=1, keepdims=True) + 1e-10 * jnp.exp(-u_max)
    denom = jnp.maximum(denom, 1e-30)
    p = delta * pl.reciprocal(denom, approx=True)                    # (TL, Wp)

    # sum_w p[l,w] * Ec[lvm[l,w]]  ==  S @ Ec_table  with
    # S[l,k] = sum_{w: lvm[l,w]==k} p[l,w]   (padded lanes have p == 0).
    # K-unrolled masked row-sums — no (TL, Wp, Kp) intermediate.
    tl_len = p.shape[0]
    kp = ect.shape[0]
    cols = [jnp.sum(jnp.where(lvm == k, p, 0.0), axis=1, keepdims=True)
            for k in range(num_ec)]
    if kp > num_ec:
        cols.append(jnp.zeros((tl_len, kp - num_ec), jnp.float32))
    s = jnp.concatenate(cols, axis=1)                                # (TL, Kp)

    o = jnp.dot(s.astype(jnp.bfloat16), ect,
                preferred_element_type=jnp.float32)                  # (TL, H)
    o = o + de.astype(jnp.float32) + hidden.astype(jnp.float32)

    # dropout is identity at inference; classifier is a bias-free Linear.
    logits_ref[0] = jnp.dot(o.astype(jnp.bfloat16), wcls,
                            preferred_element_type=jnp.float32)


def wmseg_memory_classifier(hidden, emb_a, word_mask, label_value_matrix,
                            de_sum, ec_table, wcls_t, *, tl=None):
    """Fused WordKVMN memory + classifier.  Returns logits padded to Cp lanes."""
    B, L, H = hidden.shape
    W = emb_a.shape[1]
    K = ec_table.shape[0]
    C = wcls_t.shape[-1]
    inv_temper = 1.0 / (float(H) ** 0.5)

    # --- pad to TPU-friendly shapes (padded lanes contribute exactly 0) ------
    w_pad = _round_up(W, 128)
    c_pad = _round_up(C, 128)
    k_pad = _round_up(K, 16)

    mask = jnp.clip(word_mask, 0.0, 1.0).astype(jnp.bfloat16)
    lvm = label_value_matrix.astype(jnp.int8)          # label values < 10
    if w_pad != W:
        emb_a = jnp.pad(emb_a, ((0, 0), (0, w_pad - W), (0, 0)))
        mask = jnp.pad(mask, ((0, 0), (0, 0), (0, w_pad - W)))
        lvm = jnp.pad(lvm, ((0, 0), (0, 0), (0, w_pad - W)))

    # One-time glue transpose so the kernel contracts (TL,H)@(H,Wp) directly.
    emba_t = jnp.transpose(emb_a, (0, 2, 1)).astype(jnp.bfloat16)    # (B, H, Wp)
    hidden_bf = hidden.astype(jnp.bfloat16)
    de_bf = de_sum.astype(jnp.bfloat16)
    ect_p = jnp.pad(ec_table, ((0, k_pad - K), (0, 0))).astype(jnp.bfloat16)
    wcls_p = jnp.pad(wcls_t, ((0, 0), (0, c_pad - C))).astype(jnp.bfloat16)

    # --- L tiling: multiples of 32 (int8/bf16 block tiling) or the full L ----
    if tl is None:
        tl = next((t for t in (512, 256, 128, 64, 32) if L % t == 0), L)
    n_lt = L // tl
    # NOTE(v7x): with 2 TCs/chip keep B * n_lt >= 2 (both grid axes parallel).

    # VMEM budget: double-buffered blocks + headroom for f32 (TL, Wp) temps.
    blk_bytes = (tl * H * 2 + H * w_pad * 2 + tl * w_pad * 2 + tl * w_pad
                 + tl * H * 2 + k_pad * H * 2 + H * c_pad * 2 + tl * c_pad * 4)
    vmem_limit = int(min(96 * 2**20,
                         max(16 * 2**20,
                             2 * blk_bytes + 4 * (tl * w_pad * 4) + (4 << 20))))

    kernel = functools.partial(wmseg_kernel, inv_temper=inv_temper, num_ec=K)
    return pl.pallas_call(
        kernel,
        out_shape=jax.ShapeDtypeStruct((B, L, c_pad), jnp.float32),
        grid_spec=pltpu.PrefetchScalarGridSpec(
            num_scalar_prefetch=0,
            grid=(B, n_lt),
            in_specs=[
                pl.BlockSpec((1, tl, H), lambda b, t: (b, t, 0)),      # hidden bf16
                pl.BlockSpec((1, H, w_pad), lambda b, t: (b, 0, 0)),   # emb_a^T bf16
                pl.BlockSpec((1, tl, w_pad), lambda b, t: (b, t, 0)),  # mask bf16
                pl.BlockSpec((1, tl, w_pad), lambda b, t: (b, t, 0)),  # lvm int8
                pl.BlockSpec((1, tl, H), lambda b, t: (b, t, 0)),      # de bf16
                pl.BlockSpec((k_pad, H), lambda b, t: (0, 0)),         # Ec table bf16
                pl.BlockSpec((H, c_pad), lambda b, t: (0, 0)),         # classifier bf16
            ],
            out_specs=pl.BlockSpec((1, tl, c_pad), lambda b, t: (b, t, 0)),
        ),
        compiler_params=pltpu.CompilerParams(
            dimension_semantics=("parallel", "parallel"),
            vmem_limit_bytes=vmem_limit),
    )(hidden_bf, emba_t, mask, lvm, de_bf, ect_p, wcls_p)


# -----------------------------------------------------------------------------
# Linear-chain CRF (plain JAX glue; tiny label set, sequential over L)
# -----------------------------------------------------------------------------
# TODO(synk): external NCRF++ CRF (extra START/STOP tags, tagset_size-3 quirk)
# is not reproducible from the given source; a standard linear-chain CRF over
# the full `num_labels` tag set is used instead.
def crf_nll_and_viterbi(logits, attention_mask, labels, transitions):
    B, L, C = logits.shape
    maskf = attention_mask.astype(jnp.float32)

    # gold path score
    emit = jnp.take_along_axis(logits, labels[..., None], axis=-1)[..., 0]
    emit_score = jnp.sum(emit * maskf, axis=1)
    trans = transitions[labels[:, :-1], labels[:, 1:]]
    trans_score = jnp.sum(trans * maskf[:, 1:] * maskf[:, :-1], axis=1)
    gold = emit_score + trans_score

    xs = (jnp.swapaxes(logits[:, 1:], 0, 1),
          jnp.swapaxes(maskf[:, 1:], 0, 1))

    # forward algorithm (log partition)
    def fwd_step(alpha, x):
        logit_t, m_t = x
        scores = alpha[:, :, None] + transitions[None] + logit_t[:, None, :]
        new_alpha = jax.nn.logsumexp(scores, axis=1)
        new_alpha = jnp.where(m_t[:, None] > 0, new_alpha, alpha)
        return new_alpha, None

    alpha_last, _ = jax.lax.scan(fwd_step, logits[:, 0], xs)
    log_z = jax.nn.logsumexp(alpha_last, axis=-1)
    total_loss = jnp.sum(log_z - gold)

    # viterbi decode
    def vit_step(score, x):
        logit_t, m_t = x
        cand = score[:, :, None] + transitions[None]        # (B, C, C)
        best_prev = jnp.argmax(cand, axis=1)                 # (B, C)
        best_score = jnp.max(cand, axis=1) + logit_t
        new_score = jnp.where(m_t[:, None] > 0, best_score, score)
        bp = jnp.where(m_t[:, None] > 0, best_prev,
                       jnp.broadcast_to(jnp.arange(C)[None, :], best_prev.shape))
        return new_score, bp

    final_score, bps = jax.lax.scan(vit_step, logits[:, 0], xs)   # bps: (L-1,B,C)
    best_scores = jnp.max(final_score, axis=-1)
    best_last = jnp.argmax(final_score, axis=-1)

    def backtrack(tag_next, bp_t):
        tag_t = jnp.take_along_axis(bp_t, tag_next[:, None], axis=1)[:, 0]
        return tag_t, tag_next

    tag0, tags_tail = jax.lax.scan(backtrack, best_last, bps, reverse=True)
    tag_seq = jnp.concatenate([tag0[None], tags_tail], axis=0)    # (L, B)
    tag_seq = jnp.swapaxes(tag_seq, 0, 1)                         # (B, L)
    return total_loss, best_scores, tag_seq


# -----------------------------------------------------------------------------
# Full WMSeg forward
# -----------------------------------------------------------------------------
def wmseg_forward(params, input_ids, attention_mask, labels,
                  word_seq, label_value_matrix, word_mask, freq, avfreq):
    # TODO(synk): BertModel encoder is an external pretrained module; a
    # deterministic embedding-table lookup is used as its stand-in.
    sequence_output = params["bert_embed"][input_ids]             # (B, L, H)

    # WordKVMN gathers (glue).  Ed/Ee appear in the output only as
    # sum_w(Ed + Ee), independent of the attention weights, so they are
    # pre-reduced to (B, L, H) with a scan over W — no (B, L, W, H) temp.
    emb_a = params["word_embedding_a"][word_seq]                  # (B, W, H)

    d_tab = params["word_embedding_d"]
    e_tab = params["word_embedding_e"]

    def de_step(acc, idx):
        f_w, a_w = idx                                            # (B, L) each
        return acc + d_tab[f_w] + e_tab[a_w], None

    de_sum, _ = jax.lax.scan(
        de_step,
        jnp.zeros(sequence_output.shape, jnp.float32),
        (jnp.moveaxis(freq, -1, 0), jnp.moveaxis(avfreq, -1, 0)))  # (B, L, H)

    num_labels = params["classifier_w_t"].shape[-1]
    logits_pad = wmseg_memory_classifier(
        sequence_output, emb_a, word_mask, label_value_matrix, de_sum,
        params["word_embedding_c"], params["classifier_w_t"])
    logits = logits_pad[..., :num_labels]                         # (B, L, C)

    total_loss, scores, tag_seq = crf_nll_and_viterbi(
        logits, attention_mask, labels, params["crf_transitions"])
    return total_loss, tag_seq


# -----------------------------------------------------------------------------
# Deterministic setup + run
# -----------------------------------------------------------------------------
if __name__ == "__main__":
    B, L, H, W, C = 2, 8, 32, 8, 7      # batch, seq, hidden, ngram-mem, labels
    VOCAB, WORD_SIZE = 100, 50

    key = jax.random.PRNGKey(0)
    keys = jax.random.split(key, 12)

    params = {
        "bert_embed": 0.02 * jax.random.normal(keys[0], (VOCAB, H), jnp.float32),
        "word_embedding_a": 0.02 * jax.random.normal(keys[1], (WORD_SIZE, H), jnp.float32),
        "word_embedding_c": 0.02 * jax.random.normal(keys[2], (10, H), jnp.float32),
        "word_embedding_d": 0.02 * jax.random.normal(keys[3], (WORD_SIZE, H), jnp.float32),
        "word_embedding_e": 0.02 * jax.random.normal(keys[4], (WORD_SIZE, H), jnp.float32),
        "classifier_w_t": 0.02 * jax.random.normal(keys[5], (H, C), jnp.float32),
        "crf_transitions": 0.1 * jax.random.normal(keys[6], (C, C), jnp.float32),
    }

    input_ids = jax.random.randint(keys[7], (B, L), 0, VOCAB, jnp.int32)
    attention_mask = jnp.ones((B, L), jnp.int32)
    labels = jax.random.randint(keys[8], (B, L), 0, C, jnp.int32)
    word_seq = jax.random.randint(keys[9], (B, W), 0, WORD_SIZE, jnp.int32)
    label_value_matrix = jax.random.randint(keys[10], (B, L, W), 0, 10, jnp.int32)
    word_mask = (label_value_matrix > 0).astype(jnp.float32) * 1.5  # exercises clamp
    freq = jax.random.randint(keys[11], (B, L, W), 0, WORD_SIZE, jnp.int32)
    avfreq = jax.random.randint(keys[7], (B, L, W), 0, WORD_SIZE, jnp.int32)

    total_loss, tag_seq = jax.jit(wmseg_forward)(
        params, input_ids, attention_mask, labels,
        word_seq, label_value_matrix, word_mask, freq, avfreq)
    jax.block_until_ready((total_loss, tag_seq))

    assert tag_seq.shape == (B, L)
    assert jnp.isfinite(total_loss)
    print("KERNEL_OK")
</pallas_src>

<mosaic_0001>
module attributes {stable_mosaic.version = 11 : i64} {
  func.func @wmseg_kernel(%arg0: i32, %arg1: i32, %arg2: memref<1x8x32xbf16, #tpu.memory_space<vmem>>, %arg3: memref<1x32x128xbf16, #tpu.memory_space<vmem>>, %arg4: memref<1x8x128xbf16, #tpu.memory_space<vmem>>, %arg5: memref<1x8x128xi8, #tpu.memory_space<vmem>>, %arg6: memref<1x8x32xbf16, #tpu.memory_space<vmem>>, %arg7: memref<16x32xbf16, #tpu.memory_space<vmem>>, %arg8: memref<32x128xbf16, #tpu.memory_space<vmem>>, %arg9: memref<1x8x128xf32, #tpu.memory_space<vmem>>) attributes {dimension_semantics = [#tpu.dimension_semantics<parallel>, #tpu.dimension_semantics<parallel>], iteration_bounds = array<i64: 2, 1>, scalar_prefetch = 0 : i64, scratch_operands = 0 : i64, tpu.core_type = #tpu.core_type<tc>, window_params = [{transform_indices = @transform_0, window_bounds = array<i64: 1, 8, 32>}, {transform_indices = @transform_1, window_bounds = array<i64: 1, 32, 128>}, {transform_indices = @transform_2, window_bounds = array<i64: 1, 8, 128>}, {transform_indices = @transform_3, window_bounds = array<i64: 1, 8, 128>}, {transform_indices = @transform_4, window_bounds = array<i64: 1, 8, 32>}, {pipeline_mode = #tpu.pipeline_mode<synchronous>, transform_indices = @transform_5, window_bounds = array<i64: 16, 32>}, {pipeline_mode = #tpu.pipeline_mode<synchronous>, transform_indices = @transform_6, window_bounds = array<i64: 32, 128>}, {transform_indices = @transform_7, window_bounds = array<i64: 1, 8, 128>}]} {
    %c0 = arith.constant 0 : index
    %c0_0 = arith.constant 0 : index
    %c0_1 = arith.constant 0 : index
    %0 = vector.load %arg2[%c0, %c0_0, %c0_1] : memref<1x8x32xbf16, #tpu.memory_space<vmem>>, vector<1x8x32xbf16>
    %1 = vector.shape_cast %0 : vector<1x8x32xbf16> to vector<8x32xbf16>
    %c0_2 = arith.constant 0 : index
    %c0_3 = arith.constant 0 : index
    %c0_4 = arith.constant 0 : index
    %2 = vector.load %arg3[%c0_2, %c0_3, %c0_4] : memref<1x32x128xbf16, #tpu.memory_space<vmem>>, vector<1x32x128xbf16>
    %3 = vector.shape_cast %2 : vector<1x32x128xbf16> to vector<32x128xbf16>
    %c0_5 = arith.constant 0 : index
    %c0_6 = arith.constant 0 : index
    %c0_7 = arith.constant 0 : index
    %4 = vector.load %arg4[%c0_5, %c0_6, %c0_7] : memref<1x8x128xbf16, #tpu.memory_space<vmem>>, vector<1x8x128xbf16>
    %5 = vector.shape_cast %4 : vector<1x8x128xbf16> to vector<8x128xbf16>
    %6 = arith.extf %5 : vector<8x128xbf16> to vector<8x128xf32>
    %c0_8 = arith.constant 0 : index
    %c0_9 = arith.constant 0 : index
    %c0_10 = arith.constant 0 : index
    %7 = vector.load %arg5[%c0_8, %c0_9, %c0_10] : memref<1x8x128xi8, #tpu.memory_space<vmem>>, vector<1x8x128xi8>
    %8 = vector.shape_cast %7 : vector<1x8x128xi8> to vector<8x128xi8>
    %9 = arith.extsi %8 : vector<8x128xi8> to vector<8x128xi32>
    %c0_11 = arith.constant 0 : index
    %c0_12 = arith.constant 0 : index
    %c0_13 = arith.constant 0 : index
    %10 = vector.load %arg6[%c0_11, %c0_12, %c0_13] : memref<1x8x32xbf16, #tpu.memory_space<vmem>>, vector<1x8x32xbf16>
    %11 = vector.shape_cast %10 : vector<1x8x32xbf16> to vector<8x32xbf16>
    %c0_14 = arith.constant 0 : index
    %c0_15 = arith.constant 0 : index
    %12 = vector.load %arg7[%c0_14, %c0_15] : memref<16x32xbf16, #tpu.memory_space<vmem>>, vector<16x32xbf16>
    %c0_16 = arith.constant 0 : index
    %c0_17 = arith.constant 0 : index
    %13 = vector.load %arg8[%c0_16, %c0_17] : memref<32x128xbf16, #tpu.memory_space<vmem>>, vector<32x128xbf16>
    %cst = arith.constant dense<0.000000e+00> : vector<8x128xf32>
    %14 = tpu.matmul %1, %3, %cst {dimension_numbers = #tpu.dot_dimension_numbers<[1], [0], [0], [1], [0, 0, 1, 1], [], []>} : vector<8x32xbf16>, vector<32x128xbf16>, vector<8x128xf32> -> vector<8x128xf32>
    %cst_18 = arith.constant 0.176776692 : f32
    %15 = vector.broadcast %cst_18 : f32 to vector<8x128xf32>
    %16 = arith.mulf %14, %15 : vector<8x128xf32>
    %cst_19 = arith.constant 0.000000e+00 : f32
    %17 = vector.broadcast %cst_19 : f32 to vector<8x128xf32>
    %18 = arith.cmpf ogt, %6, %17 : vector<8x128xf32>
    %cst_20 = arith.constant -1.000000e+30 : f32
    %19 = vector.broadcast %cst_20 : f32 to vector<8x128xf32>
    %20 = arith.select %18, %16, %19 : vector<8x128xi1>, vector<8x128xf32>
    %cst_21 = arith.constant dense<0xFF800000> : vector<8xf32>
    %21 = vector.multi_reduction <maximumf>, %20, %cst_21 [1] : vector<8x128xf32> to vector<8xf32>
    %22 = vector.shape_cast %21 : vector<8xf32> to vector<8x1xf32>
    %cst_22 = arith.constant 0.000000e+00 : f32
    %23 = vector.broadcast %cst_22 : f32 to vector<8x1xf32>
    %24 = arith.maximumf %22, %23 : vector<8x1xf32>
    %cst_23 = arith.constant 0.000000e+00 : f32
    %25 = vector.broadcast %cst_23 : f32 to vector<8x128xf32>
    %26 = arith.cmpf ogt, %6, %25 : vector<8x128xf32>
    %27 = vector.broadcast %24 : vector<8x1xf32> to vector<8x128xf32>
    %28 = arith.subf %16, %27 : vector<8x128xf32>
    %29 = math.exp %28 : vector<8x128xf32>
    %30 = arith.mulf %29, %6 : vector<8x128xf32>
    %cst_24 = arith.constant 0.000000e+00 : f32
    %31 = vector.broadcast %cst_24 : f32 to vector<8x128xf32>
    %32 = arith.select %26, %30, %31 : vector<8x128xi1>, vector<8x128xf32>
    %cst_25 = arith.constant dense<0.000000e+00> : vector<8xf32>
    %33 = vector.multi_reduction <add>, %32, %cst_25 [1] : vector<8x128xf32> to vector<8xf32>
    %34 = vector.shape_cast %33 : vector<8xf32> to vector<8x1xf32>
    %cst_26 = arith.constant 0.000000e+00 : f32
    %35 = vector.broadcast %cst_26 : f32 to vector<8x1xf32>
    %36 = arith.subf %35, %24 : vector<8x1xf32>
    %37 = math.exp %36 : vector<8x1xf32>
    %cst_27 = arith.constant 1.000000e-10 : f32
    %38 = vector.broadcast %cst_27 : f32 to vector<8x1xf32>
    %39 = arith.mulf %38, %37 : vector<8x1xf32>
    %40 = arith.addf %34, %39 : vector<8x1xf32>
    %cst_28 = arith.constant 1.000000e-30 : f32
    %41 = vector.broadcast %cst_28 : f32 to vector<8x1xf32>
    %42 = arith.maximumf %40, %41 : vector<8x1xf32>
    %43 = tpu.reciprocal %42 {approx = true} : vector<8x1xf32> -> vector<8x1xf32>
    %44 = vector.broadcast %43 : vector<8x1xf32> to vector<8x128xf32>
    %45 = arith.mulf %32, %44 : vector<8x128xf32>
    %c0_i32 = arith.constant 0 : i32
    %46 = vector.broadcast %c0_i32 : i32 to vector<8x128xi32>
    %47 = arith.cmpi eq, %9, %46 : vector<8x128xi32>
    %cst_29 = arith.constant 0.000000e+00 : f32
    %48 = vector.broadcast %cst_29 : f32 to vector<8x128xf32>
    %49 = arith.select %47, %45, %48 : vector<8x128xi1>, vector<8x128xf32>
    %cst_30 = arith.constant dense<0.000000e+00> : vector<8xf32>
    %50 = vector.multi_reduction <add>, %49, %cst_30 [1] : vector<8x128xf32> to vector<8xf32>
    %51 = vector.shape_cast %50 : vector<8xf32> to vector<8x1xf32>
    %c1_i32 = arith.constant 1 : i32
    %52 = vector.broadcast %c1_i32 : i32 to vector<8x128xi32>
    %53 = arith.cmpi eq, %9, %52 : vector<8x128xi32>
    %cst_31 = arith.constant 0.000000e+00 : f32
    %54 = vector.broadcast %cst_31 : f32 to vector<8x128xf32>
    %55 = arith.select %53, %45, %54 : vector<8x128xi1>, vector<8x128xf32>
    %cst_32 = arith.constant dense<0.000000e+00> : vector<8xf32>
    %56 = vector.multi_reduction <add>, %55, %cst_32 [1] : vector<8x128xf32> to vector<8xf32>
    %57 = vector.shape_cast %56 : vector<8xf32> to vector<8x1xf32>
    %c2_i32 = arith.constant 2 : i32
    %58 = vector.broadcast %c2_i32 : i32 to vector<8x128xi32>
    %59 = arith.cmpi eq, %9, %58 : vector<8x128xi32>
    %cst_33 = arith.constant 0.000000e+00 : f32
    %60 = vector.broadcast %cst_33 : f32 to vector<8x128xf32>
    %61 = arith.select %59, %45, %60 : vector<8x128xi1>, vector<8x128xf32>
    %cst_34 = arith.constant dense<0.000000e+00> : vector<8xf32>
    %62 = vector.multi_reduction <add>, %61, %cst_34 [1] : vector<8x128xf32> to vector<8xf32>
    %63 = vector.shape_cast %62 : vector<8xf32> to vector<8x1xf32>
    %c3_i32 = arith.constant 3 : i32
    %64 = vector.broadcast %c3_i32 : i32 to vector<8x128xi32>
    %65 = arith.cmpi eq, %9, %64 : vector<8x128xi32>
    %cst_35 = arith.constant 0.000000e+00 : f32
    %66 = vector.broadcast %cst_35 : f32 to vector<8x128xf32>
    %67 = arith.select %65, %45, %66 : vector<8x128xi1>, vector<8x128xf32>
    %cst_36 = arith.constant dense<0.000000e+00> : vector<8xf32>
    %68 = vector.multi_reduction <add>, %67, %cst_36 [1] : vector<8x128xf32> to vector<8xf32>
    %69 = vector.shape_cast %68 : vector<8xf32> to vector<8x1xf32>
    %c4_i32 = arith.constant 4 : i32
    %70 = vector.broadcast %c4_i32 : i32 to vector<8x128xi32>
    %71 = arith.cmpi eq, %9, %70 : vector<8x128xi32>
    %cst_37 = arith.constant 0.000000e+00 : f32
    %72 = vector.broadcast %cst_37 : f32 to vector<8x128xf32>
    %73 = arith.select %71, %45, %72 : vector<8x128xi1>, vector<8x128xf32>
    %cst_38 = arith.constant dense<0.000000e+00> : vector<8xf32>
    %74 = vector.multi_reduction <add>, %73, %cst_38 [1] : vector<8x128xf32> to vector<8xf32>
    %75 = vector.shape_cast %74 : vector<8xf32> to vector<8x1xf32>
    %c5_i32 = arith.constant 5 : i32
    %76 = vector.broadcast %c5_i32 : i32 to vector<8x128xi32>
    %77 = arith.cmpi eq, %9, %76 : vector<8x128xi32>
    %cst_39 = arith.constant 0.000000e+00 : f32
    %78 = vector.broadcast %cst_39 : f32 to vector<8x128xf32>
    %79 = arith.select %77, %45, %78 : vector<8x128xi1>, vector<8x128xf32>
    %cst_40 = arith.constant dense<0.000000e+00> : vector<8xf32>
    %80 = vector.multi_reduction <add>, %79, %cst_40 [1] : vector<8x128xf32> to vector<8xf32>
    %81 = vector.shape_cast %80 : vector<8xf32> to vector<8x1xf32>
    %c6_i32 = arith.constant 6 : i32
    %82 = vector.broadcast %c6_i32 : i32 to vector<8x128xi32>
    %83 = arith.cmpi eq, %9, %82 : vector<8x128xi32>
    %cst_41 = arith.constant 0.000000e+00 : f32
    %84 = vector.broadcast %cst_41 : f32 to vector<8x128xf32>
    %85 = arith.select %83, %45, %84 : vector<8x128xi1>, vector<8x128xf32>
    %cst_42 = arith.constant dense<0.000000e+00> : vector<8xf32>
    %86 = vector.multi_reduction <add>, %85, %cst_42 [1] : vector<8x128xf32> to vector<8xf32>
    %87 = vector.shape_cast %86 : vector<8xf32> to vector<8x1xf32>
    %c7_i32 = arith.constant 7 : i32
    %88 = vector.broadcast %c7_i32 : i32 to vector<8x128xi32>
    %89 = arith.cmpi eq, %9, %88 : vector<8x128xi32>
    %cst_43 = arith.constant 0.000000e+00 : f32
    %90 = vector.broadcast %cst_43 : f32 to vector<8x128xf32>
    %91 = arith.select %89, %45, %90 : vector<8x128xi1>, vector<8x128xf32>
    %cst_44 = arith.constant dense<0.000000e+00> : vector<8xf32>
    %92 = vector.multi_reduction <add>, %91, %cst_44 [1] : vector<8x128xf32> to vector<8xf32>
    %93 = vector.shape_cast %92 : vector<8xf32> to vector<8x1xf32>
    %c8_i32 = arith.constant 8 : i32
    %94 = vector.broadcast %c8_i32 : i32 to vector<8x128xi32>
    %95 = arith.cmpi eq, %9, %94 : vector<8x128xi32>
    %cst_45 = arith.constant 0.000000e+00 : f32
    %96 = vector.broadcast %cst_45 : f32 to vector<8x128xf32>
    %97 = arith.select %95, %45, %96 : vector<8x128xi1>, vector<8x128xf32>
    %cst_46 = arith.constant dense<0.000000e+00> : vector<8xf32>
    %98 = vector.multi_reduction <add>, %97, %cst_46 [1] : vector<8x128xf32> to vector<8xf32>
    %99 = vector.shape_cast %98 : vector<8xf32> to vector<8x1xf32>
    %c9_i32 = arith.constant 9 : i32
    %100 = vector.broadcast %c9_i32 : i32 to vector<8x128xi32>
    %101 = arith.cmpi eq, %9, %100 : vector<8x128xi32>
    %cst_47 = arith.constant 0.000000e+00 : f32
    %102 = vector.broadcast %cst_47 : f32 to vector<8x128xf32>
    %103 = arith.select %101, %45, %102 : vector<8x128xi1>, vector<8x128xf32>
    %cst_48 = arith.constant dense<0.000000e+00> : vector<8xf32>
    %104 = vector.multi_reduction <add>, %103, %cst_48 [1] : vector<8x128xf32> to vector<8xf32>
    %105 = vector.shape_cast %104 : vector<8xf32> to vector<8x1xf32>
    %cst_49 = arith.constant 0.000000e+00 : f32
    %106 = vector.broadcast %cst_49 : f32 to vector<8x6xf32>
    %107 = tpu.concatenate %51, %57, %63, %69, %75, %81, %87, %93, %99, %105, %106 in 1 : vector<8x1xf32>, vector<8x1xf32>, vector<8x1xf32>, vector<8x1xf32>, vector<8x1xf32>, vector<8x1xf32>, vector<8x1xf32>, vector<8x1xf32>, vector<8x1xf32>, vector<8x1xf32>, vector<8x6xf32> -> vector<8x16xf32>
    %108 = arith.truncf %107 : vector<8x16xf32> to vector<8x16xbf16>
    %cst_50 = arith.constant dense<0.000000e+00> : vector<8x32xf32>
    %109 = tpu.matmul %108, %12, %cst_50 {dimension_numbers = #tpu.dot_dimension_numbers<[1], [0], [0], [1], [0, 0, 1, 1], [], []>} : vector<8x16xbf16>, vector<16x32xbf16>, vector<8x32xf32> -> vector<8x32xf32>
    %110 = arith.extf %11 : vector<8x32xbf16> to vector<8x32xf32>
    %111 = arith.addf %109, %110 : vector<8x32xf32>
    %112 = arith.extf %1 : vector<8x32xbf16> to vector<8x32xf32>
    %113 = arith.addf %111, %112 : vector<8x32xf32>
    %114 = arith.truncf %113 : vector<8x32xf32> to vector<8x32xbf16>
    %cst_51 = arith.constant dense<0.000000e+00> : vector<8x128xf32>
    %115 = tpu.matmul %114, %13, %cst_51 {dimension_numbers = #tpu.dot_dimension_numbers<[1], [0], [0], [1], [0, 0, 1, 1], [], []>} : vector<8x32xbf16>, vector<32x128xbf16>, vector<8x128xf32> -> vector<8x128xf32>
    %c0_52 = arith.constant 0 : index
    %c0_53 = arith.constant 0 : index
    %c0_54 = arith.constant 0 : index
    %116 = vector.load %arg9[%c0_52, %c0_53, %c0_54] : memref<1x8x128xf32, #tpu.memory_space<vmem>>, vector<1x8x128xf32>
    %117 = vector.shape_cast %116 : vector<1x8x128xf32> to vector<8x128xf32>
    %118 = vector.shape_cast %115 : vector<8x128xf32> to vector<1x8x128xf32>
    tpu.vector_store %arg9[%c0_52, %c0_53, %c0_54], %118 {strides = array<i32>} : memref<1x8x128xf32, #tpu.memory_space<vmem>>, vector<1x8x128xf32>,
    return
  }
  func.func @transform_0(%arg0: i32, %arg1: i32) -> (i32, i32, i32) {
    %c0_i32 = arith.constant 0 : i32
    %c0_i32_0 = arith.constant 0 : i32
    return %arg0, %arg1, %c0_i32 : i32, i32, i32
  }
  func.func @transform_1(%arg0: i32, %arg1: i32) -> (i32, i32, i32) {
    %c0_i32 = arith.constant 0 : i32
    %c0_i32_0 = arith.constant 0 : i32
    %c0_i32_1 = arith.constant 0 : i32
    return %arg0, %c0_i32, %c0_i32_0 : i32, i32, i32
  }
  func.func @transform_2(%arg0: i32, %arg1: i32) -> (i32, i32, i32) {
    %c0_i32 = arith.constant 0 : i32
    %c0_i32_0 = arith.constant 0 : i32
    return %arg0, %arg1, %c0_i32 : i32, i32, i32
  }
  func.func @transform_3(%arg0: i32, %arg1: i32) -> (i32, i32, i32) {
    %c0_i32 = arith.constant 0 : i32
    %c0_i32_0 = arith.constant 0 : i32
    return %arg0, %arg1, %c0_i32 : i32, i32, i32
  }
  func.func @transform_4(%arg0: i32, %arg1: i32) -> (i32, i32, i32) {
    %c0_i32 = arith.constant 0 : i32
    %c0_i32_0 = arith.constant 0 : i32
    return %arg0, %arg1, %c0_i32 : i32, i32, i32
  }
  func.func @transform_5(%arg0: i32, %arg1: i32) -> (i32, i32) {
    %c0_i32 = arith.constant 0 : i32
    %c0_i32_0 = arith.constant 0 : i32
    %c0_i32_1 = arith.constant 0 : i32
    return %c0_i32, %c0_i32_0 : i32, i32
  }
  func.func @transform_6(%arg0: i32, %arg1: i32) -> (i32, i32) {
    %c0_i32 = arith.constant 0 : i32
    %c0_i32_0 = arith.constant 0 : i32
    %c0_i32_1 = arith.constant 0 : i32
    return %c0_i32, %c0_i32_0 : i32, i32
  }
  func.func @transform_7(%arg0: i32, %arg1: i32) -> (i32, i32, i32) {
    %c0_i32 = arith.constant 0 : i32
    %c0_i32_0 = arith.constant 0 : i32
    return %arg0, %arg1, %c0_i32 : i32, i32, i32
  }
}

</mosaic_0001>

<bundles_post_ra>
// kernel: custom-call.6
= control target key start
LH: loop header
LB: loop body
LE: loop exit
PB: predicated region body
PF: predicated region fallthrough
CT: control target
= control target key end

     0   :  { %s6_s0 = inlined_call_operand.vmem [shape: f32[2,8,32], index: 0, kind: output, shape index: {}]  }

// kernel: custom-call.15
= control target key start
LH: loop header
LB: loop body
LE: loop exit
PB: predicated region body
PF: predicated region fallthrough
CT: control target
= control target key end

     0   :  { %s6_s0 = inlined_call_operand.vmem [shape: s32[7,2,7], index: 0, kind: output, shape index: {}]  }

// kernel: wmseg_forward.1
= control target key start
LH: loop header
LB: loop body
LE: loop exit
PB: predicated region body
PF: predicated region fallthrough
CT: control target
= control target key end

     0   :  { %s861_s24 = smov 0   ;;  %s863_s25 = smov 0   ;;  %s932_s0 = inlined_call_operand.vmem [shape: bf16[2,8,32], index: 0, kind: input, shape index: {}]   ;;  %s933_s1 = inlined_call_operand.vmem [shape: bf16[2,32,128], index: 1, kind: input, shape index: {}]   ;;  %s934_s2 = inlined_call_operand.vmem [shape: bf16[2,8,128], index: 2, kind: input, shape index: {}]   ;;  %s935_s3 = inlined_call_operand.vmem [shape: s8[2,8,128], index: 3, kind: input, shape index: {}]   ;;  %s936_s4 = inlined_call_operand.vmem [shape: bf16[2,8,32], index: 4, kind: input, shape index: {}]   ;;  %s937_s5 = inlined_call_operand.vmem [shape: bf16[16,32], index: 5, kind: input, shape index: {}]   ;;  %s938_s6 = inlined_call_operand.vmem [shape: bf16[32,128], index: 6, kind: input, shape index: {}]   ;;  %s939_s7 = inlined_call_operand.vmem [shape: f32[2,8,128], index: 7, kind: output, shape index: {}]  }
   0x1   :  { %s865_s26 = smov 0  }
   0x2 LB: > { %s29_s27 = sadd.s32 1, %s815_s25  ;;  %p728_p0 = scmp.ge.s32.totalorder %s819_s26, 1  ;;  %s819_s26 = sphi %s865_s26, %s17_s26   ;;  %s815_s25 = sphi %s863_s25, %s941_s25   ;;  %s811_s24 = sphi %s861_s24, %s940_s24  }
   0x3   : > { %p31_p1 = scmp.ge.s32.totalorder %s29_s27, 2  ;;  %p307_p2 = scmp.lt.s32.totalorder %s819_s26, 3 }
   0x5   : > { %s943_s27 = smov (%p31_p1, %s29_s27), 0  ;;  %p308_p3 = pnand %p728_p0, %p307_p2 }
   0x6   : > { %p369_p4 = scmp.lt.s32.totalorder (!%p308_p3), %s811_s24, 1 }
   0x7   : > { %311 = sbr.rel (%p308_p3) target bundleno = 832 (0x340), region = 48 }
   0xc   : > { %s945_s24 = smov (!%p369_p4, %s811_s24), 1  ;;  %vm438_vm0 = vcmask 261120   ;;  %v764_v37 = vld [vmem:[%s937_s5] sm:$0xff]  ;;  %vm516_vm12 = vcmask 7168   ;;  %vm518_vm13 = vcmask 15360   ;;  %vm520_vm14 = vcmask 23552  }
   0xd   : > { %s761_s28 = sshll.u32 %s945_s24, 4  ;;  %s886_s9 = sshll.u32 %s945_s24, 2  ;;  %555 = vmatpush.bf16.msra.mxu1 %v764_v37  ;;  %vm522_vm15 = vcmask 31744   ;;  %v766_v59 = vld [vmem:[%s938_s6 + $0x8] sm:$0xff]  ;;  %v765_v60 = vld [vmem:[%s938_s6] sm:$0xff] }
   0xe   : > { %s380_s8 = scalar_lea.vmem %s933_s1, %s761_s28  ;;  %s375_s12 = scalar_lea.vmem %s932_s0, %s886_s9  ;;  %585 = vmatpush.bf16.msra.mxu2 %v766_v59 }
   0xf   : > { %v763_v0 = vld [vmem:[%s380_s8 + $0x8] sm:$0xff]  ;;  %v762_v1 = vld [vmem:[%s380_s8] sm:$0xff]  ;;  %s387_s15 = scalar_lea.vmem %s934_s2, %s886_s9  ;;  %s733_s16 = sshll.u32 %s945_s24, 1 }
  0x10   : > { %448 = vmatpush.bf16.msra.mxu0 %v763_v0  ;;  %v892_v2 = vld [vmem:[%s375_s12] sm:$0xf]  ;;  %s394_s19 = scalar_lea.vmem %s935_s3, %s733_s16  ;;  %s401_s10 = scalar_lea.vmem %s936_s4, %s886_s9 }
  0x11   : > { %v415_v3 = vld [vmem:[%s387_s15] sm:$0xf]  ;;  %v561_v63 = vunpack.c.l.bf16 %v892_v2  ;;  %s735_s11 = sshll.u32 %s945_s24, 3 }
  0x12   : > { %v416_v4 = vunpack.c.l.bf16 %v415_v3  ;;  %v417_v23 = vld [vmem:[%s394_s19] sm:$0x3]  ;;  %586 = vmatpush.bf16.msra.mxu2 %v765_v60  ;;  %s408_s14 = scalar_lea.vmem %s939_s7, %s735_s11 }
  0x13   : > { %v418_v24 = vunpack.c.0.s8 %v417_v23  ;;  %v419_v61 = vld [vmem:[%s401_s10] sm:$0xf] }
  0x14   : > { %449 = vmatpush.bf16.msra.mxu0 %v762_v1  ;;  %vm456_vm1 = vcmp.gt.f32.partialorder %v416_v4, 0.0  ;;  %v537_v62 = vunpack.c.l.bf16 %v419_v61 }
  0x15   : > { %vm492_vm2 = vcmp.eq.s32.totalorder %v418_v24, 4  ;;  %vm484_vm3 = vcmp.eq.s32.totalorder %v418_v24, 2  ;;  %vm476_vm4 = vcmp.eq.s32.totalorder %v418_v24, 0  ;;  %vm504_vm5 = vcmp.eq.s32.totalorder %v418_v24, 7 }
  0x16   : > { %vm488_vm6 = vcmp.eq.s32.totalorder %v418_v24, 3  ;;  %vm480_vm7 = vcmp.eq.s32.totalorder %v418_v24, 1  ;;  %vm500_vm8 = vcmp.eq.s32.totalorder %v418_v24, 6  ;;  %vm496_vm9 = vcmp.eq.s32.totalorder %v418_v24, 5 }
  0x17   : > { %744 = vmatmul.msk.bf16.vlgmr.msra.gmra.mxu0 %vm438_vm0, %v892_v2  ;;  %vm512_vm10 = vcmp.eq.s32.totalorder %v418_v24, 9  ;;  %vm508_vm11 = vcmp.eq.s32.totalorder %v418_v24, 8 }
  0x94   : > { %v451_v5 = vpop.f32.mrf.mxu0 }
  0x95   : > { %v455_v6 = vmul.f32 0.17677669, %v451_v5 }
  0x97   : > { %v457_v7 = vsel %vm456_vm1, %v455_v6, -1e+30 }
  0x98   : > { %458 = vmax.xlane.f32.xlu0 %v457_v7 }
  0x9c   : > { %v453_v8 = vpop.f32.mrf.mxu0 }
 0x10b   : > { %v459_v9 = vpop.xlane.xlu0 %458 }
 0x10c   : > { %v460_v10 = vmax.f32 %v459_v9, 0.0 }
 0x10e   : > { %v461_v11 = vsub.f32 %v455_v6, %v460_v10  ;;  %v468_v16 = vsub.f32 0.0, %v460_v10 }
 0x110   : > { %v462_v12 = vmul.f32 1.442695, %v461_v11  ;;  %v469_v17 = vmul.f32 1.442695, %v468_v16 }
 0x112   : > { %791 = vpow2.f32 %v462_v12 }
 0x113   : > { %793 = vpow2.f32 %v469_v17 }
 0x118   : > { %v792_v13 = vpop.eup %791 }
 0x119   : > { %v464_v14 = vmul.f32 %v792_v13, %v416_v4  ;;  %v794_v18 = vpop.eup %793 }
 0x11a   : > { %v471_v19 = vmul.f32 1e-10, %v794_v18 }
 0x11b   : > { %v465_v15 = vsel %vm456_vm1, %v464_v14, 0.0  ;;  %vm524_vm1 = vcmask 39936  }
 0x11c   : > { %466 = vadd.xlane.f32.xlu0 %v465_v15 }
 0x18f   : > { %v467_v20 = vpop.xlane.xlu0 %466 }
 0x190   : > { %v472_v21 = vadd.f32 %v471_v19, %v467_v20 }
 0x192   : > { %v473_v22 = vmax.f32 %v472_v21, 1e-30 }
 0x194   : > { %795 = vrcp.f32 %v473_v22 }
 0x19a   : > { %v796_v25 = vpop.eup %795 }
 0x19b   : > { %v475_v26 = vmul.f32 %v796_v25, %v465_v15 }
 0x19d   : > { %v493_v27 = vsel %vm492_vm2, %v475_v26, 0.0  ;;  %v485_v28 = vsel %vm484_vm3, %v475_v26, 0.0  ;;  %v477_v29 = vsel %vm476_vm4, %v475_v26, 0.0  ;;  %v505_v30 = vsel %vm504_vm5, %v475_v26, 0.0 }
 0x19e   : > { %494 = vadd.xlane.f32.xlu0 %v493_v27  ;;  %486 = vadd.xlane.f32.xlu2 %v485_v28  ;;  %v489_v31 = vsel %vm488_vm6, %v475_v26, 0.0  ;;  %v481_v32 = vsel %vm480_vm7, %v475_v26, 0.0  ;;  %v501_v33 = vsel %vm500_vm8, %v475_v26, 0.0  ;;  %v497_v34 = vsel %vm496_vm9, %v475_v26, 0.0 }
 0x19f   : > { %478 = vadd.xlane.f32.xlu1 %v477_v29  ;;  %v513_v35 = vsel %vm512_vm10, %v475_v26, 0.0  ;;  %v509_v36 = vsel %vm508_vm11, %v475_v26, 0.0  ;;  %vm526_vm2 = vcmask 48128   ;;  %vm528_vm3 = vcmask 56320  }
 0x1a0   : > { %vm530_vm4 = vcmask 64512   ;;  %vm532_vm5 = vcmask 72704   ;;  %vm534_vm6 = vcmask 80896   ;;  %vm544_vm7 = vcmask 130048  }
 0x1a6   : > { %506 = vadd.xlane.f32.xlu0 %v505_v30  ;;  %490 = vadd.xlane.f32.xlu2 %v489_v31 }
 0x1a7   : > { %482 = vadd.xlane.f32.xlu1 %v481_v32 }
 0x1ae   : > { %502 = vadd.xlane.f32.xlu2 %v501_v33 }
 0x1af   : > { %498 = vadd.xlane.f32.xlu1 %v497_v34 }
 0x1b6   : > { %514 = vadd.xlane.f32.xlu2 %v513_v35 }
 0x1b7   : > { %510 = vadd.xlane.f32.xlu1 %v509_v36 }
 0x211   : > { %v487_v38 = vpop.xlane.xlu2 %486  ;;  %v495_v44 = vpop.xlane.xlu0 %494 }
 0x212   : > { %v479_v39 = vpop.xlane.xlu1 %478 }
 0x219   : > { %v491_v40 = vpop.xlane.xlu2 %490  ;;  %v507_v51 = vpop.xlane.xlu0 %506 }
 0x21a   : > { %v483_v41 = vpop.xlane.xlu1 %482 }
 0x21b   : > { %v517_v42 = vsel %vm516_vm12, %v479_v39, %v483_v41 }
 0x21c   : > { %v519_v43 = vsel %vm518_vm13, %v517_v42, %v487_v38 }
 0x21d   : > { %v521_v45 = vsel %vm520_vm14, %v519_v43, %v491_v40 }
 0x21e   : > { %v523_v48 = vsel %vm522_vm15, %v521_v45, %v495_v44 }
 0x221   : > { %v503_v46 = vpop.xlane.xlu2 %502 }
 0x222   : > { %v499_v47 = vpop.xlane.xlu1 %498 }
 0x223   : > { %v525_v49 = vsel %vm524_vm1, %v523_v48, %v499_v47 }
 0x224   : > { %v527_v50 = vsel %vm526_vm2, %v525_v49, %v503_v46 }
 0x225   : > { %v529_v53 = vsel %vm528_vm3, %v527_v50, %v507_v51 }
 0x229   : > { %v515_v52 = vpop.xlane.xlu2 %514 }
 0x22a   : > { %v511_v54 = vpop.xlane.xlu1 %510 }
 0x22b   : > { %v531_v55 = vsel %vm530_vm4, %v529_v53, %v511_v54 }
 0x22c   : > { %v533_v56 = vsel %vm532_vm5, %v531_v55, %v515_v52 }
 0x22d   : > { %v535_v57 = vsel %vm534_vm6, %v533_v56, 0.0 }
 0x22e   : > { %v536_v58 = vpack.c.bf16 %v535_v57, %v535_v57 }
 0x230   : > { %749 = vmatmul.msk.bf16.vlgmr.msra.gmra.mxu1 %vm544_vm7, %v536_v58 }
 0x2ad   : > { %v557_v0 = vpop.f32.mrf.mxu1 }
 0x2ae   : > { %v558_v1 = vadd.f32 %v557_v0, %v537_v62 }
 0x2b0   : > { %v562_v3 = vadd.f32 %v561_v63, %v558_v1 }
 0x2b2   : > { %v563_v4 = vpack.c.bf16 %v562_v3, %v562_v3 }
 0x2b4   : > { %758 = vmatmul.msk.bf16.vlgmr.msra.gmra.mxu2 %vm438_vm0, %v563_v4 }
 0x2b5   : > { %v559_v5 = vpop.f32.mrf.mxu1 }
 0x337   : > { %v588_v6 = vpop.f32.mrf.mxu2 }
 0x338   : > { %592 = vst [vmem:[%s408_s14] sm:$0xff] %v588_v6 }
 0x33f   : > { %v590_v7 = vpop.f32.mrf.mxu2 }
 0x340 PF: > { %s17_s26 = sadd.s32 1, %s819_s26   ;;  %s940_s24 = smov %s815_s25 }
 0x341   : > { %p14_p5 = scmp.ge.s32.totalorder %s17_s26, 4   ;;  %s941_s25 = smov %s943_s27 }
 0x343   :  { %16 = sbr.rel (!%p14_p5) target bundleno = 2 (0x2), region = 90 }

</bundles_post_ra>
